<compile_context>
chip_gen: v5e
topology: v5e:2x2
jax: 0.10.0
libtpu: 0.0.40
codegen_flags: <defaults>
</compile_context>

<pallas_src>
import functools

import jax
import jax.numpy as jnp
from jax import lax
from jax.experimental import pallas as pl
from jax.experimental.pallas import tpu as pltpu

_EPS = 1e-5  # nn.GroupNorm default eps
_MiB = 1024 * 1024


def _vmem_capacity_bytes():
    """Physical per-core VMEM (128 MiB on v5e/v6e, 64 MiB on v7x)."""
    try:
        info = pltpu.get_tpu_info()
        cap = getattr(info, "vmem_capacity_bytes", None)
        if cap:
            return int(cap)
    except Exception:
        pass
    return 64 * _MiB  # conservative fallback (safe on every generation)


def _choose_block_b(n, l, per_sample_bytes, budget_bytes):
    """Samples per grid step: amortise per-step overhead for small L while
    keeping >= 2 grid points when N >= 2 (v7x has 2 TensorCores) and staying
    inside the VMEM budget."""
    max_b = n if n < 2 else max(1, n // 2)
    target_rows = 512
    best = 1
    for b in range(1, max_b + 1):
        if n % b:
            continue
        if b * l > max(target_rows, l):
            break
        if b * per_sample_bytes > max(budget_bytes, per_sample_bytes):
            break
        best = b
    return best


def _shift_l(y, direction):
    """Shift a (C, L) slab along the lane/L axis by one with zero fill.

    direction=+1 -> out[:, l] = y[:, l-1]; direction=-1 -> out[:, l] = y[:, l+1].
    """
    c, l = y.shape
    if l % 128 == 0:
        # pltpu.roll runs on the XLU slot, the mask on the VPU: no store traffic.
        col = lax.broadcasted_iota(jnp.int32, y.shape, 1)
        rolled = pltpu.roll(y, 1 if direction > 0 else -1, axis=1)
        edge = 0 if direction > 0 else l - 1
        return jnp.where(col == edge, jnp.zeros_like(y), rolled)
    # Tiny / lane-unaligned L: a zero-column concat is cheap here.
    zcol = jnp.zeros((c, 1), y.dtype)
    if direction > 0:
        return jnp.concatenate([zcol, y[:, :-1]], axis=1)
    return jnp.concatenate([y[:, 1:], zcol], axis=1)


def _group_norm_cl(y, gamma, beta, groups, inv_count, eps=_EPS):
    """GroupNorm of one (C, L) f32 slab; contiguous channel groups, stable
    two-pass variance, group stats via tiny reshape-reductions (no (C,C) matmul)."""
    c, _ = y.shape
    cg = c // groups
    s = jnp.sum(y, axis=-1, keepdims=True)                            # (C, 1)
    if cg == 1:
        mean = s * inv_count
        d = y - mean
        var = jnp.sum(d * d, axis=-1, keepdims=True) * inv_count      # (C, 1)
        inv = lax.rsqrt(var + eps)
    else:
        sg = jnp.sum(s.reshape(groups, cg), axis=-1, keepdims=True)   # (G, 1)
        mean = jnp.broadcast_to(sg * inv_count, (groups, cg)).reshape(c, 1)
        d = y - mean
        ss = jnp.sum(d * d, axis=-1, keepdims=True)                   # (C, 1)
        vg = jnp.sum(ss.reshape(groups, cg), axis=-1, keepdims=True) * inv_count
        inv = jnp.broadcast_to(lax.rsqrt(vg + eps), (groups, cg)).reshape(c, 1)
    return d * (inv * gamma) + beta


@functools.partial(jax.jit, static_argnames=("planes", "matmul_dtype"))
def bottleneck1d(x_ncl, params, *, planes, matmul_dtype=jnp.bfloat16):
    """Forward pass of Bottleneck1D. x_ncl: (N, C_in, L), PyTorch NCL layout."""
    N, c_in, L = x_ncl.shape
    c_out = 4 * planes
    assert c_in == c_out, "identity residual requires inplanes == planes * 4"

    groups1 = min(32, planes)
    groups3 = min(32, c_out)
    assert planes % groups1 == 0 and c_out % groups3 == 0
    # conv2 preserves planes / L / group count (stride == 1), so gn1 and gn2
    # legitimately share the same group structure.
    inv_cnt1 = 1.0 / float((planes // groups1) * L)
    inv_cnt3 = 1.0 / float((c_out // groups3) * L)

    w1, w2, w3, g1, b1, g2, b2, g3, b3 = params
    mm = jnp.dtype(matmul_dtype)
    # PyTorch Conv1d weights are (out, in, k): already the (M, K) orientation
    # we need for W @ X in NCL layout.
    w1m = w1[:, :, 0].astype(mm)                                              # (P, Cin)
    w2f = jnp.transpose(w2, (0, 2, 1)).reshape(planes, 3 * planes).astype(mm)  # (P, 3P)
    w3m = w3[:, :, 0].astype(mm)                                              # (4P, P)
    g1c = g1.reshape(planes, 1).astype(jnp.float32)
    b1c = b1.reshape(planes, 1).astype(jnp.float32)
    g2c = g2.reshape(planes, 1).astype(jnp.float32)
    b2c = b2.reshape(planes, 1).astype(jnp.float32)
    g3c = g3.reshape(c_out, 1).astype(jnp.float32)
    b3c = b3.reshape(c_out, 1).astype(jnp.float32)

    # ---- VMEM budget & per-grid-step sample batching ---------------------------
    x_bytes = x_ncl.dtype.itemsize
    weight_bytes = (w1m.size + w2f.size + w3m.size) * mm.itemsize
    param_bytes = 4 * (4 * planes + 2 * c_out)
    act_bytes = L * (4 * (2 * planes + c_out)                 # y1/y2/y3 in f32
                     + mm.itemsize * (6 * planes + c_in))     # bf16 shift/concat temps + casts
    io_bytes = 2 * L * (c_in + c_out) * x_bytes               # double-buffered in/out blocks
    per_sample = act_bytes + io_bytes

    cap = _vmem_capacity_bytes()
    budget = int(0.70 * cap) - 2 * (weight_bytes + param_bytes)
    block_b = _choose_block_b(N, L, per_sample, budget)
    need = block_b * per_sample + 2 * (weight_bytes + param_bytes)
    vmem_limit = int(min(max(int(1.5 * need), 32 * _MiB), int(0.75 * cap)))

    flops = 2 * N * L * (c_in * planes + 3 * planes * planes + planes * c_out)
    transc = N * (2 * groups1 + groups3)                      # one rsqrt per group per GN
    cost = pl.CostEstimate(
        flops=flops, transcendentals=transc,
        bytes_accessed=N * L * (c_in + c_out) * x_bytes + weight_bytes + param_bytes)

    def kernel(x_ref, w1_ref, w2_ref, w3_ref,
               g1_ref, b1_ref, g2_ref, b2_ref, g3_ref, b3_ref, o_ref):
        w1k = w1_ref[...]
        w2k = w2_ref[...]
        w3k = w3_ref[...]
        ga1 = g1_ref[...]; be1 = b1_ref[...]
        ga2 = g2_ref[...]; be2 = b2_ref[...]
        ga3 = g3_ref[...]; be3 = b3_ref[...]
        for b in range(block_b):                                  # static unroll
            x = x_ref[b]                                          # (Cin, L), input dtype
            # conv1 (1x1): channel-contracting matmul; L stays on the lanes.
            y = jnp.dot(w1k, x.astype(mm), preferred_element_type=jnp.float32)
            y = _group_norm_cl(y, ga1, be1, groups1, inv_cnt1)
            y = jnp.maximum(y, 0.0)                               # (P, L) f32
            # conv2 (3-tap, padding=1, stride=1): lane shifts in matmul dtype,
            # three taps folded into a single K=3P matmul.
            yb = y.astype(mm)
            y_prev = _shift_l(yb, +1)                             # y[:, l-1]
            y_next = _shift_l(yb, -1)                             # y[:, l+1]
            z = jnp.concatenate([y_prev, yb, y_next], axis=0)     # (3P, L)
            y2 = jnp.dot(w2k, z, preferred_element_type=jnp.float32)
            y2 = _group_norm_cl(y2, ga2, be2, groups1, inv_cnt1)
            y2 = jnp.maximum(y2, 0.0)
            # conv3 (1x1) -> 4*planes.
            y3 = jnp.dot(w3k, y2.astype(mm), preferred_element_type=jnp.float32)
            y3 = _group_norm_cl(y3, ga3, be3, groups3, inv_cnt3)
            # residual add + relu (dropout_prob == 0 -> nn.Identity).
            o_ref[b] = jnp.maximum(y3 + x.astype(jnp.float32), 0.0).astype(o_ref.dtype)

    def full(a):
        nd = a.ndim
        return pl.BlockSpec(a.shape, lambda n, nd=nd: (0,) * nd)

    out = pl.pallas_call(
        kernel,
        out_shape=jax.ShapeDtypeStruct((N, c_out, L), x_ncl.dtype),
        grid_spec=pltpu.PrefetchScalarGridSpec(
            num_scalar_prefetch=0,
            grid=(N // block_b,),
            in_specs=[
                pl.BlockSpec((block_b, c_in, L), lambda n: (n, 0, 0)),
                full(w1m), full(w2f), full(w3m),
                full(g1c), full(b1c), full(g2c), full(b2c), full(g3c), full(b3c),
            ],
            out_specs=pl.BlockSpec((block_b, c_out, L), lambda n: (n, 0, 0)),
        ),
        compiler_params=pltpu.CompilerParams(
            dimension_semantics=("parallel",),
            vmem_limit_bytes=vmem_limit),
        cost_estimate=cost,
    )(x_ncl, w1m, w2f, w3m, g1c, b1c, g2c, b2c, g3c, b3c)
    return out


# ------------------------- pure-JAX reference (for checking) -------------------
def _ref_group_norm(y_ncl, gamma, beta, groups, eps=_EPS):
    n, c, l = y_ncl.shape
    cg = c // groups
    yg = y_ncl.reshape(n, groups, cg, l)
    mean = yg.mean(axis=(2, 3), keepdims=True)
    var = yg.var(axis=(2, 3), keepdims=True)
    yn = ((yg - mean) / jnp.sqrt(var + eps)).reshape(n, c, l)
    return yn * gamma.reshape(1, c, 1) + beta.reshape(1, c, 1)


def _ref_forward(x_ncl, params, planes):
    w1, w2, w3, g1, b1, g2, b2, g3, b3 = params
    conv1x1 = lambda w, x: jnp.einsum("oi,nil->nol", w[:, :, 0], x)
    y = conv1x1(w1, x_ncl)
    y = _ref_group_norm(y, g1, b1, min(32, planes))
    y = jnp.maximum(y, 0.0)
    yp = jnp.pad(y, ((0, 0), (0, 0), (1, 1)))
    y2 = (jnp.einsum("oi,nil->nol", w2[:, :, 0], yp[:, :, :-2])
          + jnp.einsum("oi,nil->nol", w2[:, :, 1], yp[:, :, 1:-1])
          + jnp.einsum("oi,nil->nol", w2[:, :, 2], yp[:, :, 2:]))
    y2 = _ref_group_norm(y2, g2, b2, min(32, planes))
    y2 = jnp.maximum(y2, 0.0)
    y3 = conv1x1(w3, y2)
    y3 = _ref_group_norm(y3, g3, b3, min(32, 4 * planes))
    return jnp.maximum(y3 + x_ncl, 0.0)


if __name__ == "__main__":
    N, planes, L = 2, 8, 16
    inplanes = 4 * planes  # 32 -> identity residual path

    key = jax.random.PRNGKey(0)
    ks = jax.random.split(key, 10)
    x = jax.random.normal(ks[0], (N, inplanes, L), jnp.float32)

    # Deterministic synthetic parameters in PyTorch Conv1d (out, in, k) layout.
    w1 = 0.1 * jax.random.normal(ks[1], (planes, inplanes, 1), jnp.float32)   # conv1 1x1
    w2 = 0.1 * jax.random.normal(ks[2], (planes, planes, 3), jnp.float32)     # conv2 3-tap
    w3 = 0.1 * jax.random.normal(ks[3], (4 * planes, planes, 1), jnp.float32)  # conv3 1x1
    g1 = 1.0 + 0.1 * jax.random.normal(ks[4], (planes,), jnp.float32)
    b1 = 0.1 * jax.random.normal(ks[5], (planes,), jnp.float32)
    g2 = 1.0 + 0.1 * jax.random.normal(ks[6], (planes,), jnp.float32)
    b2 = 0.1 * jax.random.normal(ks[7], (planes,), jnp.float32)
    g3 = 1.0 + 0.1 * jax.random.normal(ks[8], (4 * planes,), jnp.float32)
    b3 = 0.1 * jax.random.normal(ks[9], (4 * planes,), jnp.float32)
    params = (w1, w2, w3, g1, b1, g2, b2, g3, b3)

    ref = _ref_forward(x, params, planes)

    # Exactness check: f32 matmul path against the pure-JAX reference.
    out_f32 = bottleneck1d(x, params, planes=planes, matmul_dtype=jnp.float32)
    jax.block_until_ready(out_f32)
    assert out_f32.shape == (N, inplanes, L)
    assert jnp.allclose(out_f32, ref, atol=5e-4, rtol=5e-4), "f32 mismatch vs reference"

    # Performance path: bf16 matmul operands, f32 accumulation / norms / residual.
    out_bf16 = bottleneck1d(x, params, planes=planes, matmul_dtype=jnp.bfloat16)
    jax.block_until_ready(out_bf16)
    assert out_bf16.shape == (N, inplanes, L)
    assert jnp.allclose(out_bf16, ref, atol=3e-2, rtol=3e-2), "bf16 mismatch vs reference"

    print("KERNEL_OK")
</pallas_src>

<mosaic_0001>
module attributes {stable_mosaic.version = 11 : i64} {
  func.func @kernel(%arg0: i32, %arg1: memref<1x32x16xf32, #tpu.memory_space<vmem>>, %arg2: memref<8x32xf32, #tpu.memory_space<vmem>>, %arg3: memref<8x24xf32, #tpu.memory_space<vmem>>, %arg4: memref<32x8xf32, #tpu.memory_space<vmem>>, %arg5: memref<8x1xf32, #tpu.memory_space<vmem>>, %arg6: memref<8x1xf32, #tpu.memory_space<vmem>>, %arg7: memref<8x1xf32, #tpu.memory_space<vmem>>, %arg8: memref<8x1xf32, #tpu.memory_space<vmem>>, %arg9: memref<32x1xf32, #tpu.memory_space<vmem>>, %arg10: memref<32x1xf32, #tpu.memory_space<vmem>>, %arg11: memref<1x32x16xf32, #tpu.memory_space<vmem>>) attributes {dimension_semantics = [#tpu.dimension_semantics<parallel>], iteration_bounds = array<i64: 2>, scalar_prefetch = 0 : i64, scratch_operands = 0 : i64, tpu.core_type = #tpu.core_type<tc>, window_params = [{transform_indices = @transform_0, window_bounds = array<i64: 1, 32, 16>}, {pipeline_mode = #tpu.pipeline_mode<synchronous>, transform_indices = @transform_1, window_bounds = array<i64: 8, 32>}, {pipeline_mode = #tpu.pipeline_mode<synchronous>, transform_indices = @transform_2, window_bounds = array<i64: 8, 24>}, {pipeline_mode = #tpu.pipeline_mode<synchronous>, transform_indices = @transform_3, window_bounds = array<i64: 32, 8>}, {pipeline_mode = #tpu.pipeline_mode<synchronous>, transform_indices = @transform_4, window_bounds = array<i64: 8, 1>}, {pipeline_mode = #tpu.pipeline_mode<synchronous>, transform_indices = @transform_5, window_bounds = array<i64: 8, 1>}, {pipeline_mode = #tpu.pipeline_mode<synchronous>, transform_indices = @transform_6, window_bounds = array<i64: 8, 1>}, {pipeline_mode = #tpu.pipeline_mode<synchronous>, transform_indices = @transform_7, window_bounds = array<i64: 8, 1>}, {pipeline_mode = #tpu.pipeline_mode<synchronous>, transform_indices = @transform_8, window_bounds = array<i64: 32, 1>}, {pipeline_mode = #tpu.pipeline_mode<synchronous>, transform_indices = @transform_9, window_bounds = array<i64: 32, 1>}, {transform_indices = @transform_10, window_bounds = array<i64: 1, 32, 16>}]} {
    %c0 = arith.constant 0 : index
    %c0_0 = arith.constant 0 : index
    %0 = vector.load %arg2[%c0, %c0_0] : memref<8x32xf32, #tpu.memory_space<vmem>>, vector<8x32xf32>
    %c0_1 = arith.constant 0 : index
    %c0_2 = arith.constant 0 : index
    %1 = vector.load %arg3[%c0_1, %c0_2] : memref<8x24xf32, #tpu.memory_space<vmem>>, vector<8x24xf32>
    %c0_3 = arith.constant 0 : index
    %c0_4 = arith.constant 0 : index
    %2 = vector.load %arg4[%c0_3, %c0_4] : memref<32x8xf32, #tpu.memory_space<vmem>>, vector<32x8xf32>
    %c0_5 = arith.constant 0 : index
    %c0_6 = arith.constant 0 : index
    %3 = vector.load %arg5[%c0_5, %c0_6] : memref<8x1xf32, #tpu.memory_space<vmem>>, vector<8x1xf32>
    %c0_7 = arith.constant 0 : index
    %c0_8 = arith.constant 0 : index
    %4 = vector.load %arg6[%c0_7, %c0_8] : memref<8x1xf32, #tpu.memory_space<vmem>>, vector<8x1xf32>
    %c0_9 = arith.constant 0 : index
    %c0_10 = arith.constant 0 : index
    %5 = vector.load %arg7[%c0_9, %c0_10] : memref<8x1xf32, #tpu.memory_space<vmem>>, vector<8x1xf32>
    %c0_11 = arith.constant 0 : index
    %c0_12 = arith.constant 0 : index
    %6 = vector.load %arg8[%c0_11, %c0_12] : memref<8x1xf32, #tpu.memory_space<vmem>>, vector<8x1xf32>
    %c0_13 = arith.constant 0 : index
    %c0_14 = arith.constant 0 : index
    %7 = vector.load %arg9[%c0_13, %c0_14] : memref<32x1xf32, #tpu.memory_space<vmem>>, vector<32x1xf32>
    %c0_15 = arith.constant 0 : index
    %c0_16 = arith.constant 0 : index
    %8 = vector.load %arg10[%c0_15, %c0_16] : memref<32x1xf32, #tpu.memory_space<vmem>>, vector<32x1xf32>
    %c0_17 = arith.constant 0 : index
    %c0_18 = arith.constant 0 : index
    %c0_19 = arith.constant 0 : index
    %9 = vector.load %arg1[%c0_17, %c0_18, %c0_19] : memref<1x32x16xf32, #tpu.memory_space<vmem>>, vector<1x32x16xf32>
    %10 = vector.shape_cast %9 : vector<1x32x16xf32> to vector<32x16xf32>
    %cst = arith.constant dense<0.000000e+00> : vector<8x16xf32>
    %11 = tpu.matmul %0, %10, %cst {dimension_numbers = #tpu.dot_dimension_numbers<[1], [0], [0], [1], [0, 0, 1, 1], [], []>} : vector<8x32xf32>, vector<32x16xf32>, vector<8x16xf32> -> vector<8x16xf32>
    %cst_20 = arith.constant dense<0.000000e+00> : vector<8xf32>
    %12 = vector.multi_reduction <add>, %11, %cst_20 [1] : vector<8x16xf32> to vector<8xf32>
    %13 = vector.shape_cast %12 : vector<8xf32> to vector<8x1xf32>
    %cst_21 = arith.constant 6.250000e-02 : f32
    %14 = vector.broadcast %cst_21 : f32 to vector<8x1xf32>
    %15 = arith.mulf %13, %14 : vector<8x1xf32>
    %16 = vector.broadcast %15 : vector<8x1xf32> to vector<8x16xf32>
    %17 = arith.subf %11, %16 : vector<8x16xf32>
    %18 = arith.mulf %17, %17 : vector<8x16xf32>
    %cst_22 = arith.constant dense<0.000000e+00> : vector<8xf32>
    %19 = vector.multi_reduction <add>, %18, %cst_22 [1] : vector<8x16xf32> to vector<8xf32>
    %20 = vector.shape_cast %19 : vector<8xf32> to vector<8x1xf32>
    %cst_23 = arith.constant 6.250000e-02 : f32
    %21 = vector.broadcast %cst_23 : f32 to vector<8x1xf32>
    %22 = arith.mulf %20, %21 : vector<8x1xf32>
    %cst_24 = arith.constant 9.99999974E-6 : f32
    %23 = vector.broadcast %cst_24 : f32 to vector<8x1xf32>
    %24 = arith.addf %22, %23 : vector<8x1xf32>
    %25 = math.rsqrt %24 : vector<8x1xf32>
    %26 = arith.mulf %25, %3 : vector<8x1xf32>
    %27 = vector.broadcast %26 : vector<8x1xf32> to vector<8x16xf32>
    %28 = arith.mulf %17, %27 : vector<8x16xf32>
    %29 = vector.broadcast %4 : vector<8x1xf32> to vector<8x16xf32>
    %30 = arith.addf %28, %29 : vector<8x16xf32>
    %cst_25 = arith.constant 0.000000e+00 : f32
    %31 = vector.broadcast %cst_25 : f32 to vector<8x16xf32>
    %32 = arith.maximumf %30, %31 : vector<8x16xf32>
    %cst_26 = arith.constant 0.000000e+00 : f32
    %33 = vector.broadcast %cst_26 : f32 to vector<8x1xf32>
    %34 = vector.extract_strided_slice %32 {offsets = [0, 0], sizes = [8, 15], strides = [1, 1]} : vector<8x16xf32> to vector<8x15xf32>
    %35 = tpu.concatenate %33, %34 in 1 : vector<8x1xf32>, vector<8x15xf32> -> vector<8x16xf32>
    %cst_27 = arith.constant 0.000000e+00 : f32
    %36 = vector.broadcast %cst_27 : f32 to vector<8x1xf32>
    %37 = vector.extract_strided_slice %32 {offsets = [0, 1], sizes = [8, 15], strides = [1, 1]} : vector<8x16xf32> to vector<8x15xf32>
    %38 = tpu.concatenate %37, %36 in 1 : vector<8x15xf32>, vector<8x1xf32> -> vector<8x16xf32>
    %39 = tpu.concatenate %35, %32, %38 in 0 : vector<8x16xf32>, vector<8x16xf32>, vector<8x16xf32> -> vector<24x16xf32>
    %cst_28 = arith.constant dense<0.000000e+00> : vector<8x16xf32>
    %40 = tpu.matmul %1, %39, %cst_28 {dimension_numbers = #tpu.dot_dimension_numbers<[1], [0], [0], [1], [0, 0, 1, 1], [], []>} : vector<8x24xf32>, vector<24x16xf32>, vector<8x16xf32> -> vector<8x16xf32>
    %cst_29 = arith.constant dense<0.000000e+00> : vector<8xf32>
    %41 = vector.multi_reduction <add>, %40, %cst_29 [1] : vector<8x16xf32> to vector<8xf32>
    %42 = vector.shape_cast %41 : vector<8xf32> to vector<8x1xf32>
    %cst_30 = arith.constant 6.250000e-02 : f32
    %43 = vector.broadcast %cst_30 : f32 to vector<8x1xf32>
    %44 = arith.mulf %42, %43 : vector<8x1xf32>
    %45 = vector.broadcast %44 : vector<8x1xf32> to vector<8x16xf32>
    %46 = arith.subf %40, %45 : vector<8x16xf32>
    %47 = arith.mulf %46, %46 : vector<8x16xf32>
    %cst_31 = arith.constant dense<0.000000e+00> : vector<8xf32>
    %48 = vector.multi_reduction <add>, %47, %cst_31 [1] : vector<8x16xf32> to vector<8xf32>
    %49 = vector.shape_cast %48 : vector<8xf32> to vector<8x1xf32>
    %cst_32 = arith.constant 6.250000e-02 : f32
    %50 = vector.broadcast %cst_32 : f32 to vector<8x1xf32>
    %51 = arith.mulf %49, %50 : vector<8x1xf32>
    %cst_33 = arith.constant 9.99999974E-6 : f32
    %52 = vector.broadcast %cst_33 : f32 to vector<8x1xf32>
    %53 = arith.addf %51, %52 : vector<8x1xf32>
    %54 = math.rsqrt %53 : vector<8x1xf32>
    %55 = arith.mulf %54, %5 : vector<8x1xf32>
    %56 = vector.broadcast %55 : vector<8x1xf32> to vector<8x16xf32>
    %57 = arith.mulf %46, %56 : vector<8x16xf32>
    %58 = vector.broadcast %6 : vector<8x1xf32> to vector<8x16xf32>
    %59 = arith.addf %57, %58 : vector<8x16xf32>
    %cst_34 = arith.constant 0.000000e+00 : f32
    %60 = vector.broadcast %cst_34 : f32 to vector<8x16xf32>
    %61 = arith.maximumf %59, %60 : vector<8x16xf32>
    %cst_35 = arith.constant dense<0.000000e+00> : vector<32x16xf32>
    %62 = tpu.matmul %2, %61, %cst_35 {dimension_numbers = #tpu.dot_dimension_numbers<[1], [0], [0], [1], [0, 0, 1, 1], [], []>} : vector<32x8xf32>, vector<8x16xf32>, vector<32x16xf32> -> vector<32x16xf32>
    %cst_36 = arith.constant dense<0.000000e+00> : vector<32xf32>
    %63 = vector.multi_reduction <add>, %62, %cst_36 [1] : vector<32x16xf32> to vector<32xf32>
    %64 = vector.shape_cast %63 : vector<32xf32> to vector<32x1xf32>
    %cst_37 = arith.constant 6.250000e-02 : f32
    %65 = vector.broadcast %cst_37 : f32 to vector<32x1xf32>
    %66 = arith.mulf %64, %65 : vector<32x1xf32>
    %67 = vector.broadcast %66 : vector<32x1xf32> to vector<32x16xf32>
    %68 = arith.subf %62, %67 : vector<32x16xf32>
    %69 = arith.mulf %68, %68 : vector<32x16xf32>
    %cst_38 = arith.constant dense<0.000000e+00> : vector<32xf32>
    %70 = vector.multi_reduction <add>, %69, %cst_38 [1] : vector<32x16xf32> to vector<32xf32>
    %71 = vector.shape_cast %70 : vector<32xf32> to vector<32x1xf32>
    %cst_39 = arith.constant 6.250000e-02 : f32
    %72 = vector.broadcast %cst_39 : f32 to vector<32x1xf32>
    %73 = arith.mulf %71, %72 : vector<32x1xf32>
    %cst_40 = arith.constant 9.99999974E-6 : f32
    %74 = vector.broadcast %cst_40 : f32 to vector<32x1xf32>
    %75 = arith.addf %73, %74 : vector<32x1xf32>
    %76 = math.rsqrt %75 : vector<32x1xf32>
    %77 = arith.mulf %76, %7 : vector<32x1xf32>
    %78 = vector.broadcast %77 : vector<32x1xf32> to vector<32x16xf32>
    %79 = arith.mulf %68, %78 : vector<32x16xf32>
    %80 = vector.broadcast %8 : vector<32x1xf32> to vector<32x16xf32>
    %81 = arith.addf %79, %80 : vector<32x16xf32>
    %82 = arith.addf %81, %10 : vector<32x16xf32>
    %cst_41 = arith.constant 0.000000e+00 : f32
    %83 = vector.broadcast %cst_41 : f32 to vector<32x16xf32>
    %84 = arith.maximumf %82, %83 : vector<32x16xf32>
    %c0_42 = arith.constant 0 : index
    %c0_43 = arith.constant 0 : index
    %c0_44 = arith.constant 0 : index
    %85 = vector.load %arg11[%c0_42, %c0_43, %c0_44] : memref<1x32x16xf32, #tpu.memory_space<vmem>>, vector<1x32x16xf32>
    %86 = vector.shape_cast %85 : vector<1x32x16xf32> to vector<32x16xf32>
    %87 = vector.shape_cast %84 : vector<32x16xf32> to vector<1x32x16xf32>
    tpu.vector_store %arg11[%c0_42, %c0_43, %c0_44], %87 {strides = array<i32>} : memref<1x32x16xf32, #tpu.memory_space<vmem>>, vector<1x32x16xf32>,
    return
  }
  func.func @transform_0(%arg0: i32) -> (i32, i32, i32) {
    %c0_i32 = arith.constant 0 : i32
    %c0_i32_0 = arith.constant 0 : i32
    %c0_i32_1 = arith.constant 0 : i32
    return %arg0, %c0_i32, %c0_i32_0 : i32, i32, i32
  }
  func.func @transform_1(%arg0: i32) -> (i32, i32) {
    %c0_i32 = arith.constant 0 : i32
    %c0_i32_0 = arith.constant 0 : i32
    %c0_i32_1 = arith.constant 0 : i32
    return %c0_i32, %c0_i32_0 : i32, i32
  }
  func.func @transform_2(%arg0: i32) -> (i32, i32) {
    %c0_i32 = arith.constant 0 : i32
    %c0_i32_0 = arith.constant 0 : i32
    %c0_i32_1 = arith.constant 0 : i32
    return %c0_i32, %c0_i32_0 : i32, i32
  }
  func.func @transform_3(%arg0: i32) -> (i32, i32) {
    %c0_i32 = arith.constant 0 : i32
    %c0_i32_0 = arith.constant 0 : i32
    %c0_i32_1 = arith.constant 0 : i32
    return %c0_i32, %c0_i32_0 : i32, i32
  }
  func.func @transform_4(%arg0: i32) -> (i32, i32) {
    %c0_i32 = arith.constant 0 : i32
    %c0_i32_0 = arith.constant 0 : i32
    %c0_i32_1 = arith.constant 0 : i32
    return %c0_i32, %c0_i32_0 : i32, i32
  }
  func.func @transform_5(%arg0: i32) -> (i32, i32) {
    %c0_i32 = arith.constant 0 : i32
    %c0_i32_0 = arith.constant 0 : i32
    %c0_i32_1 = arith.constant 0 : i32
    return %c0_i32, %c0_i32_0 : i32, i32
  }
  func.func @transform_6(%arg0: i32) -> (i32, i32) {
    %c0_i32 = arith.constant 0 : i32
    %c0_i32_0 = arith.constant 0 : i32
    %c0_i32_1 = arith.constant 0 : i32
    return %c0_i32, %c0_i32_0 : i32, i32
  }
  func.func @transform_7(%arg0: i32) -> (i32, i32) {
    %c0_i32 = arith.constant 0 : i32
    %c0_i32_0 = arith.constant 0 : i32
    %c0_i32_1 = arith.constant 0 : i32
    return %c0_i32, %c0_i32_0 : i32, i32
  }
  func.func @transform_8(%arg0: i32) -> (i32, i32) {
    %c0_i32 = arith.constant 0 : i32
    %c0_i32_0 = arith.constant 0 : i32
    %c0_i32_1 = arith.constant 0 : i32
    return %c0_i32, %c0_i32_0 : i32, i32
  }
  func.func @transform_9(%arg0: i32) -> (i32, i32) {
    %c0_i32 = arith.constant 0 : i32
    %c0_i32_0 = arith.constant 0 : i32
    %c0_i32_1 = arith.constant 0 : i32
    return %c0_i32, %c0_i32_0 : i32, i32
  }
  func.func @transform_10(%arg0: i32) -> (i32, i32, i32) {
    %c0_i32 = arith.constant 0 : i32
    %c0_i32_0 = arith.constant 0 : i32
    %c0_i32_1 = arith.constant 0 : i32
    return %arg0, %c0_i32, %c0_i32_0 : i32, i32, i32
  }
}

</mosaic_0001>

<bundles_post_ra>
// kernel: bottleneck1d.1
= control target key start
LH: loop header
LB: loop body
LE: loop exit
PB: predicated region body
PF: predicated region fallthrough
CT: control target
= control target key end

     0   :  { %s872_s13 = smov 0   ;;  %s1002_s0 = inlined_call_operand.vmem [shape: f32[2,32,16], index: 0, kind: input, shape index: {}]   ;;  %s1003_s1 = inlined_call_operand.vmem [shape: f32[8,32], index: 1, kind: input, shape index: {}]   ;;  %s1004_s2 = inlined_call_operand.vmem [shape: f32[8,24], index: 2, kind: input, shape index: {}]   ;;  %s1005_s3 = inlined_call_operand.vmem [shape: f32[32,8], index: 3, kind: input, shape index: {}]   ;;  %s1006_s4 = inlined_call_operand.vmem [shape: f32[8,1], index: 4, kind: input, shape index: {}]   ;;  %s1007_s5 = inlined_call_operand.vmem [shape: f32[8,1], index: 5, kind: input, shape index: {}]   ;;  %s1008_s6 = inlined_call_operand.vmem [shape: f32[8,1], index: 6, kind: input, shape index: {}]   ;;  %s1009_s7 = inlined_call_operand.vmem [shape: f32[8,1], index: 7, kind: input, shape index: {}]   ;;  %s1010_s8 = inlined_call_operand.vmem [shape: f32[32,1], index: 8, kind: input, shape index: {}]   ;;  %s1011_s9 = inlined_call_operand.vmem [shape: f32[32,1], index: 9, kind: input, shape index: {}]   ;;  %s1012_s10 = inlined_call_operand.vmem [shape: f32[2,32,16], index: 10, kind: output, shape index: {}]  }
   0x1 LB: > { %s757_s14 = sadd.s32 4294967295, %s812_s13   ;;  %p761_p0 = scmp.ge.s32.totalorder %s812_s13, 1  ;;  %s812_s13 = sphi %s872_s13, %s20_s13  }
   0x2   : > { %p312_p1 = scmp.lt.s32.totalorder %s812_s13, 3 }
   0x4   : > { %p313_p2 = pnand %p761_p0, %p312_p1 }
   0x5   : > { %p350_p3 = scmp.lt.s32.totalorder (!%p313_p2), %s757_s14, 1  ;;  %s815_s25 = smov (!%p313_p2), 127  }
   0x6   : > { %316 = sbr.rel (%p313_p2) target bundleno = 1669 (0x685), region = 60  ;;  %s816_s26 = smov (!%p313_p2), 1  }
   0xb   : > { %s1014_s14 = smov (!%p350_p3, %s757_s14), 1  ;;  %v360_v4 = vld [vmem:[%s1003_s1] sm:$0xff]  ;;  %vm382_vm0 = vcmask 261120   ;;  %vm406_vm1 = vcmask 130048   ;;  %v814_v12 = vmov 0   ;;  %vm451_vm5 = vcmask 121856  }
   0xc   : > { %s777_s15 = sshll.u32 %s1014_s14, 5  ;;  %791 = vset.pattern.permute.xlu1 %v814_v12  ;;  %793 = vset.pattern.permute.xlu0 %v814_v12  ;;  %v366_v21 = vld [vmem:[%s1006_s4] sm:$0xff]  ;;  %vm446_vm6 = vcmask 7168   ;;  %vm453_vm8 = vcmask 195584   ;;  %vm512_vm12 = vcmask 64512   ;;  %v364_v60 = vld [vmem:[%s1005_s3 + $0x10] sm:$0xff] }
   0xd   : > { %s354_s18 = scalar_lea.vmem %s1002_s0, %s777_s15  ;;  %792 = vset.pattern.permute.xlu2 %v814_v12  ;;  %v367_v25 = vld [vmem:[%s1007_s5] sm:$0xff]  ;;  %vm768_vm7 = vmneg %vm446_vm6  ;;  %v363_v61 = vld [vmem:[%s1005_s3 + $0x8] sm:$0xff] }
   0xe   : > { %v888_v0 = vld [vmem:[%s354_s18 + $0x18] sm:$0xff]  ;;  %v890_v1 = vld [vmem:[%s354_s18 + $0x10] sm:$0xff]  ;;  %v893_v2 = vld [vmem:[%s354_s18 + $0x8] sm:$0xff] }
   0xf   : > { %398 = vmatpush.msra.mxu0 %v888_v0  ;;  %v896_v3 = vld [vmem:[%s354_s18] sm:$0xff]  ;;  %v365_v62 = vld [vmem:[%s1005_s3 + $0x18] sm:$0xff] }
  0x10   : > { %v361_v32 = vld [vmem:[%s1004_s2] sm:$0xff] }
  0x11   : > { %399 = vmatpush.msra.mxu0 %v890_v1  ;;  %v369_v41 = vld [vmem:[%s1009_s7] sm:$0xff] }
  0x12   : > { %v368_v50 = vld [vmem:[%s1008_s6] sm:$0xff] }
  0x13   : > { %400 = vmatpush.msra.mxu0 %v893_v2  ;;  %v362_v59 = vld [vmem:[%s1005_s3] sm:$0xff] }
  0x15   : > { %401 = vmatpush.msra.mxu0 %v896_v3 }
  0x16   : > { %766 = vmatmul.msk.f32.vlgmr.msra.gmra.mxu0 %vm382_vm0, %v360_v4 }
  0x93   : > { %v403_v5 = vpop.f32.mrf.mxu0 }
  0x94   : > { %v407_v6 = vsel %vm406_vm1, %v403_v5, 0.0 }
  0x95   : > { %408 = vadd.xlane.f32.xlu0 %v407_v6 }
 0x108   : > { %v409_v7 = vpop.xlane.xlu0 %408 }
 0x109   : > { %v410_v8 = vmul.f32 0.0625, %v409_v7 }
 0x10b   : > { %v411_v9 = vsub.f32 %v403_v5, %v410_v8 }
 0x10d   : > { %v412_v10 = vmul.f32 %v411_v9, %v411_v9 }
 0x10f   : > { %v413_v11 = vsel %vm406_vm1, %v412_v10, 0.0 }
 0x110   : > { %414 = vadd.xlane.f32.xlu0 %v413_v11 }
 0x183   : > { %v415_v13 = vpop.xlane.xlu0 %414 }
 0x184   : > { %v416_v14 = vmul.f32 0.0625, %v415_v13 }
 0x186   : > { %v417_v15 = vadd.f32 1e-05, %v416_v14 }
 0x188   : > { %794 = vrsqrt.f32 %v417_v15  ;;  %vm424_vm3 = vweird.f32 %v417_v15 }
 0x18e   : > { %v795_v16 = vpop.eup %794 }
 0x18f   : > { %v419_v17 = vmul.f32 %v795_v16, %v417_v15  ;;  %vm425_vm2 = vweird.f32 %v795_v16 }
 0x190   : > { %vm426_vm4 = vmor %vm424_vm3, %vm425_vm2 }
 0x191   : > { %v420_v18 = vmul.f32 %v795_v16, %v419_v17 }
 0x193   : > { %v421_v19 = vmul.f32 0.5, %v420_v18 }
 0x195   : > { %v422_v20 = vsub.f32 1.5, %v421_v19 }
 0x197   : > { %v423_v22 = vmul.f32 %v795_v16, %v422_v20 }
 0x199   : > { %v427_v23 = vsel %vm426_vm4, %v795_v16, %v423_v22 }
 0x19a   : > { %v428_v24 = vmul.f32 %v427_v23, %v366_v21 }
 0x19c   : > { %431 = vperm.xlu1 %791, %v428_v24  }
 0x1a4   : > { %437 = vperm.xlu1 %791, %v367_v25  }
 0x20e   : > { %v432_v26 = vpop.permute.xlu1 %431 }
 0x20f   : > { %v434_v27 = vmul.f32 %v432_v26, %v411_v9 }
 0x216   : > { %v438_v28 = vpop.permute.xlu1 %437 }
 0x217   : > { %v440_v29 = vadd.f32 %v438_v28, %v434_v27 }
 0x219   : > { %v441_v30 = vmax.f32 %v440_v29, 0.0 }
 0x21b   : > { %448 = vrot.lane.b32.xlu2 %v441_v30, %s815_s25  ;;  %s359_s25 = scalar_lea.vmem %s1012_s10, %s777_s15 }
 0x223   : > { %443 = vrot.lane.b32.xlu2 %v441_v30, %s816_s26 }
 0x275   : > { %v449_v31 = vpop.permute.xlu2 %448 }
 0x276   : > { %767 = vmatpush.msk.msra.mxu1 %vm451_vm5, %v449_v31  ;;  %v374_v31 = vld [vmem:[%s1011_s9] sm:$0xff] }
 0x278   : > { %471 = vmatpush.msra.mxu1 %v441_v30 }
 0x27d   : > { %v444_v33 = vpop.permute.xlu2 %443 }
 0x27e   : > { %769 = vmatpush.msk.msra.mxu1 %vm768_vm7, %v444_v33 }
 0x27f   : > { %770 = vmatmul.msk.f32.vlgmr.msra.gmra.mxu1 %vm453_vm8, %v361_v32 }
 0x2fc   : > { %v474_v34 = vpop.f32.mrf.mxu1 }
 0x2fd   : > { %v477_v35 = vsel %vm406_vm1, %v474_v34, 0.0 }
 0x2fe   : > { %478 = vadd.xlane.f32.xlu0 %v477_v35 }
 0x312   : > { %507 = vperm.xlu0 %793, %v369_v41  }
 0x371   : > { %v479_v36 = vpop.xlane.xlu0 %478 }
 0x372   : > { %v480_v37 = vmul.f32 0.0625, %v479_v36 }
 0x374   : > { %v481_v38 = vsub.f32 %v474_v34, %v480_v37 }
 0x376   : > { %v482_v39 = vmul.f32 %v481_v38, %v481_v38 }
 0x378   : > { %v483_v40 = vsel %vm406_vm1, %v482_v39, 0.0 }
 0x379   : > { %484 = vadd.xlane.f32.xlu1 %v483_v40 }
 0x384   : > { %v508_v55 = vpop.permute.xlu0 %507 }
 0x3ec   : > { %v485_v42 = vpop.xlane.xlu1 %484 }
 0x3ed   : > { %v486_v43 = vmul.f32 0.0625, %v485_v42 }
 0x3ef   : > { %v487_v44 = vadd.f32 1e-05, %v486_v43 }
 0x3f1   : > { %796 = vrsqrt.f32 %v487_v44  ;;  %vm494_vm10 = vweird.f32 %v487_v44 }
 0x3f7   : > { %v797_v45 = vpop.eup %796 }
 0x3f8   : > { %v489_v46 = vmul.f32 %v797_v45, %v487_v44  ;;  %vm495_vm9 = vweird.f32 %v797_v45 }
 0x3f9   : > { %vm496_vm11 = vmor %vm494_vm10, %vm495_vm9 }
 0x3fa   : > { %v490_v47 = vmul.f32 %v797_v45, %v489_v46 }
 0x3fc   : > { %v491_v48 = vmul.f32 0.5, %v490_v47 }
 0x3fe   : > { %v492_v49 = vsub.f32 1.5, %v491_v48 }
 0x400   : > { %v493_v51 = vmul.f32 %v797_v45, %v492_v49 }
 0x402   : > { %v497_v52 = vsel %vm496_vm11, %v797_v45, %v493_v51 }
 0x403   : > { %v498_v53 = vmul.f32 %v497_v52, %v368_v50  ;;  %v370_v52 = vld [vmem:[%s1010_s8] sm:$0xff] }
 0x405   : > { %501 = vperm.xlu2 %792, %v498_v53  }
 0x45f   : > { %v502_v54 = vpop.permute.xlu2 %501 }
 0x460   : > { %v504_v56 = vmul.f32 %v502_v54, %v481_v38 }
 0x462   : > { %v510_v57 = vadd.f32 %v508_v55, %v504_v56 }
 0x464   : > { %v511_v58 = vmax.f32 %v510_v57, 0.0 }
 0x466   : > { %540 = vmatpush.msra.mxu2 %v511_v58  ;;  %779 = vmatpush.msra.mxu3 %v511_v58 }
 0x467   : > { %771 = vmatmul.msk.f32.vlgmr.msra.gmra.mxu2 %vm512_vm12, %v362_v59  ;;  %773 = vmatmul.msk.f32.vlgmr.msra.gmra.mxu3 %vm512_vm12, %v364_v60 }
 0x46f   : > { %772 = vmatmul.msk.f32.gmra.mxu2 %vm512_vm12, %v363_v61  ;;  %774 = vmatmul.msk.f32.gmra.mxu3 %vm512_vm12, %v365_v62 }
 0x4ea   : > { %v542_v63 = vpop.f32.mrf.mxu2  ;;  %v548_v4 = vpop.f32.mrf.mxu3 }
 0x4eb   : > { %v560_v5 = vsel %vm406_vm1, %v548_v4, 0.0  ;;  %v554_v6 = vsel %vm406_vm1, %v542_v63, 0.0 }
 0x4ec   : > { %561 = vadd.xlane.f32.xlu0 %v560_v5  ;;  %555 = vadd.xlane.f32.xlu2 %v554_v6  ;;  %v371_v5 = vld [vmem:[%s1010_s8 + $0x8] sm:$0xff] }
 0x4f2   : > { %v545_v7 = vpop.f32.mrf.mxu2  ;;  %v551_v8 = vpop.f32.mrf.mxu3 }
 0x4f3   : > { %v563_v9 = vsel %vm406_vm1, %v551_v8, 0.0  ;;  %v557_v10 = vsel %vm406_vm1, %v545_v7, 0.0 }
 0x4f4   : > { %564 = vadd.xlane.f32.xlu2 %v563_v9  ;;  %558 = vadd.xlane.f32.xlu1 %v557_v10 }
 0x55f   : > { %v562_v11 = vpop.xlane.xlu0 %561  ;;  %v556_v12 = vpop.xlane.xlu2 %555 }
 0x560   : > { %v566_v13 = vmul.f32 0.0625, %v556_v12  ;;  %v568_v14 = vmul.f32 0.0625, %v562_v11  ;;  %v375_v11 = vld [vmem:[%s1011_s9 + $0x8] sm:$0xff] }
 0x562   : > { %v938_v15 = vsub.f32 %v542_v63, %v566_v13  ;;  %v942_v17 = vsub.f32 %v548_v4, %v568_v14 }
 0x564   : > { %v574_v16 = vmul.f32 %v938_v15, %v938_v15  ;;  %v576_v24 = vmul.f32 %v942_v17, %v942_v17 }
 0x566   : > { %v578_v18 = vsel %vm406_vm1, %v574_v16, 0.0  ;;  %v584_v27 = vsel %vm406_vm1, %v576_v24, 0.0 }
 0x567   : > { %v565_v19 = vpop.xlane.xlu2 %564  ;;  %579 = vadd.xlane.f32.xlu1 %v578_v18  ;;  %v559_v20 = vpop.xlane.xlu1 %558 }
 0x568   : > { %v567_v21 = vmul.f32 0.0625, %v559_v20  ;;  %v569_v22 = vmul.f32 0.0625, %v565_v19  ;;  %v373_v19 = vld [vmem:[%s1010_s8 + $0x18] sm:$0xff] }
 0x56a   : > { %v945_v23 = vsub.f32 %v545_v7, %v567_v21  ;;  %v951_v26 = vsub.f32 %v551_v8, %v569_v22  ;;  %v372_v7 = vld [vmem:[%s1010_s8 + $0x10] sm:$0xff] }
 0x56b   : > { %v376_v21 = vld [vmem:[%s1011_s9 + $0x10] sm:$0xff] }
 0x56c   : > { %v575_v25 = vmul.f32 %v945_v23, %v945_v23  ;;  %v577_v29 = vmul.f32 %v951_v26, %v951_v26 }
 0x56e   : > { %v581_v28 = vsel %vm406_vm1, %v575_v25, 0.0  ;;  %v587_v30 = vsel %vm406_vm1, %v577_v29, 0.0  ;;  %v377_v25 = vld [vmem:[%s1011_s9 + $0x18] sm:$0xff] }
 0x56f   : > { %585 = vadd.xlane.f32.xlu1 %v584_v27  ;;  %582 = vadd.xlane.f32.xlu2 %v581_v28 }
 0x577   : > { %588 = vadd.xlane.f32.xlu2 %v587_v30 }
 0x58f   : > { %668 = vperm.xlu2 %792, %v374_v31  }
 0x5da   : > { %v580_v32 = vpop.xlane.xlu1 %579 }
 0x5db   : > { %v590_v33 = vmul.f32 0.0625, %v580_v32 }
 0x5dd   : > { %v594_v34 = vadd.f32 1e-05, %v590_v33 }
 0x5df   : > { %798 = vrsqrt.f32 %v594_v34  ;;  %vm604_vm14 = vweird.f32 %v594_v34 }
 0x5e2   : > { %v583_v35 = vpop.xlane.xlu2 %582  ;;  %v586_v36 = vpop.xlane.xlu1 %585 }
 0x5e3   : > { %v591_v37 = vmul.f32 0.0625, %v583_v35  ;;  %v592_v38 = vmul.f32 0.0625, %v586_v36 }
 0x5e5   : > { %v799_v39 = vpop.eup %798  ;;  %v595_v40 = vadd.f32 1e-05, %v591_v37  ;;  %v596_v41 = vadd.f32 1e-05, %v592_v38 }
 0x5e6   : > { %v599_v42 = vmul.f32 %v799_v39, %v594_v34  ;;  %vm605_vm13 = vweird.f32 %v799_v39 }
 0x5e7   : > { %800 = vrsqrt.f32 %v595_v40  ;;  %vm606_vm15 = vmor %vm604_vm14, %vm605_vm13  ;;  %vm614_vm3 = vweird.f32 %v595_v40  ;;  %vm624_vm5 = vweird.f32 %v596_v41 }
 0x5e8   : > { %v600_v43 = vmul.f32 %v799_v39, %v599_v42  ;;  %802 = vrsqrt.f32 %v596_v41 }
 0x5ea   : > { %v601_v44 = vmul.f32 0.5, %v600_v43  ;;  %v589_v45 = vpop.xlane.xlu2 %588 }
 0x5eb   : > { %v593_v46 = vmul.f32 0.0625, %v589_v45 }
 0x5ec   : > { %v602_v47 = vsub.f32 1.5, %v601_v44 }
 0x5ed   : > { %v801_v48 = vpop.eup %800  ;;  %v597_v49 = vadd.f32 1e-05, %v593_v46 }
 0x5ee   : > { %v803_v50 = vpop.eup %802  ;;  %v609_v51 = vmul.f32 %v801_v48, %v595_v40  ;;  %v603_v53 = vmul.f32 %v799_v39, %v602_v47  ;;  %vm615_vm0 = vweird.f32 %v801_v48 }
 0x5ef   : > { %v619_v54 = vmul.f32 %v803_v50, %v596_v41  ;;  %804 = vrsqrt.f32 %v597_v49  ;;  %vm625_vm2 = vweird.f32 %v803_v50  ;;  %vm616_vm4 = vmor %vm614_vm3, %vm615_vm0  ;;  %vm634_vm8 = vweird.f32 %v597_v49 }
 0x5f0   : > { %v610_v55 = vmul.f32 %v801_v48, %v609_v51  ;;  %v607_v56 = vsel %vm606_vm15, %v799_v39, %v603_v53  ;;  %vm626_vm6 = vmor %vm624_vm5, %vm625_vm2 }
 0x5f1   : > { %v620_v57 = vmul.f32 %v803_v50, %v619_v54  ;;  %v638_v58 = vmul.f32 %v607_v56, %v370_v52 }
 0x5f2   : > { %v611_v59 = vmul.f32 0.5, %v610_v55  ;;  %v669_v27 = vpop.permute.xlu2 %668 }
 0x5f3   : > { %v621_v60 = vmul.f32 0.5, %v620_v57  ;;  %644 = vperm.xlu1 %791, %v638_v58  }
 0x5f4   : > { %v612_v61 = vsub.f32 1.5, %v611_v59 }
 0x5f5   : > { %v805_v62 = vpop.eup %804  ;;  %v622_v63 = vsub.f32 1.5, %v621_v60 }
 0x5f6   : > { %v629_v4 = vmul.f32 %v805_v62, %v597_v49  ;;  %v613_v6 = vmul.f32 %v801_v48, %v612_v61  ;;  %vm635_vm7 = vweird.f32 %v805_v62 }
 0x5f7   : > { %v623_v8 = vmul.f32 %v803_v50, %v622_v63  ;;  %vm636_vm9 = vmor %vm634_vm8, %vm635_vm7 }
 0x5f8   : > { %v630_v9 = vmul.f32 %v805_v62, %v629_v4  ;;  %v617_v10 = vsel %vm616_vm4, %v801_v48, %v613_v6 }
 0x5f9   : > { %v639_v12 = vmul.f32 %v617_v10, %v371_v5  ;;  %v627_v13 = vsel %vm626_vm6, %v803_v50, %v623_v8 }
 0x5fa   : > { %v631_v14 = vmul.f32 0.5, %v630_v9  ;;  %v640_v16 = vmul.f32 %v627_v13, %v372_v7 }
 0x5fb   : > { %649 = vperm.xlu2 %792, %v639_v12   ;;  %673 = vperm.xlu1 %791, %v375_v11  }
 0x5fc   : > { %v632_v18 = vsub.f32 1.5, %v631_v14  ;;  %654 = vperm.xlu0 %793, %v640_v16  }
 0x5fe   : > { %v633_v20 = vmul.f32 %v805_v62, %v632_v18 }
 0x600   : > { %v637_v22 = vsel %vm636_vm9, %v805_v62, %v633_v20 }
 0x601   : > { %v641_v24 = vmul.f32 %v637_v22, %v373_v19 }
 0x603   : > { %678 = vperm.xlu2 %792, %v376_v21   ;;  %659 = vperm.xlu1 %791, %v641_v24  }
 0x60b   : > { %683 = vperm.xlu1 %791, %v377_v25  }
 0x655   : > { %v650_v29 = vpop.permute.xlu2 %649 }
 0x656   : > { %v663_v33 = vmul.f32 %v650_v29, %v945_v23 }
 0x65d   : > { %v679_v39 = vpop.permute.xlu2 %678 }
 0x665   : > { %v645_v28 = vpop.permute.xlu1 %644 }
 0x666   : > { %v662_v30 = vmul.f32 %v645_v28, %v938_v15 }
 0x668   : > { %v686_v31 = vadd.f32 %v669_v27, %v662_v30 }
 0x66a   : > { %v690_v32 = vadd.f32 %v686_v31, %v896_v3 }
 0x66c   : > { %v694_v34 = vmax.f32 %v690_v32, 0.0 }
 0x66d   : > { %v674_v35 = vpop.permute.xlu1 %673 }
 0x66e   : > { %698 = vst.msk [vmem:[%s359_s25] sm:$0xff] %vm406_vm1, %v694_v34  ;;  %v655_v36 = vpop.permute.xlu0 %654  ;;  %v687_v37 = vadd.f32 %v674_v35, %v663_v33 }
 0x66f   : > { %v664_v38 = vmul.f32 %v655_v36, %v942_v17 }
 0x670   : > { %v691_v15 = vadd.f32 %v687_v37, %v893_v2 }
 0x671   : > { %v688_v40 = vadd.f32 %v679_v39, %v664_v38 }
 0x672   : > { %v695_v3 = vmax.f32 %v691_v15, 0.0 }
 0x673   : > { %v692_v41 = vadd.f32 %v688_v40, %v890_v1 }
 0x674   : > { %699 = vst.msk [vmem:[%s359_s25 + $0x8] sm:$0xff] %vm406_vm1, %v695_v3 }
 0x675   : > { %v696_v42 = vmax.f32 %v692_v41, 0.0  ;;  %v660_v43 = vpop.permute.xlu1 %659 }
 0x676   : > { %v665_v23 = vmul.f32 %v660_v43, %v951_v26 }
 0x677   : > { %700 = vst.msk [vmem:[%s359_s25 + $0x10] sm:$0xff] %vm406_vm1, %v696_v42 }
 0x67d   : > { %v684_v44 = vpop.permute.xlu1 %683 }
 0x67e   : > { %v689_v45 = vadd.f32 %v684_v44, %v665_v23 }
 0x680   : > { %v693_v46 = vadd.f32 %v689_v45, %v888_v0 }
 0x682   : > { %v697_v17 = vmax.f32 %v693_v46, 0.0 }
 0x684   : > { %701 = vst.msk [vmem:[%s359_s25 + $0x18] sm:$0xff] %vm406_vm1, %v697_v17 }
 0x685 PF: > { %s20_s13 = sadd.s32 1, %s812_s13  }
 0x686   : > { %p17_p4 = scmp.ge.s32.totalorder %s20_s13, 4  }
 0x688   :  { %19 = sbr.rel (!%p17_p4) target bundleno = 1 (0x1), region = 90 }

</bundles_post_ra>
